<compile_context>
chip_gen: v7x
topology: tpu7x:2x2x1
jax: 0.10.0
libtpu: 0.0.40
codegen_flags: <defaults>
</compile_context>

<pallas_src>
import functools
from typing import NamedTuple

import jax
import jax.numpy as jnp
from jax.experimental import pallas as pl
from jax.experimental.pallas import tpu as pltpu


def _round_up(x, m):
    return ((x + m - 1) // m) * m


class NIGParams(NamedTuple):
    w: jax.Array          # (k_p, n_p), compute dtype, pre-padded
    b: jax.Array          # (1, n_p), float32, pre-padded
    in_features: int
    out_units: int
    tk: int               # K tile (== k_p when the W panel is VMEM-resident)
    tn: int               # N tile (== n_p for typical head sizes)


def _nig_kernel(x_ref, w_ref, b_ref, out_ref, *, out_units, tn):
    # Grid queries hoisted to the kernel top level -- NEVER inside pl.when
    # bodies (interpret-mode lowering has no rule for program_id inside the
    # generated cond branches).
    j = pl.program_id(1)
    k = pl.program_id(2)
    nk = pl.num_programs(2)

    # MXU matmul with f32 accumulation.
    part = jnp.dot(x_ref[...], w_ref[...], preferred_element_type=jnp.float32)

    @pl.when(k == 0)
    def _():
        # Fold the bias into the first K step: no zero-init memset and no
        # extra epilogue add.
        out_ref[...] = part + b_ref[...]

    @pl.when(k != 0)
    def _():
        # out block index is k-invariant -> resident in VMEM across the K loop,
        # so it doubles as the accumulator (no separate scratch).
        out_ref[...] += part

    @pl.when(k == nk - 1)
    def _():
        z = out_ref[...]
        # Stable softplus over the whole lane-dense tile (single EUP stream).
        sp = jnp.maximum(z, 0.0) + jnp.log1p(jnp.exp(-jnp.abs(z)))
        col = j * tn + jax.lax.broadcasted_iota(jnp.int32, z.shape, 1)
        is_mu = col < out_units
        is_alpha = jnp.logical_and(col >= 2 * out_units, col < 3 * out_units)
        # mu quarter: identity; alpha quarter: softplus + 1; v/beta: softplus.
        # Padded columns (col >= 4*out_units) get softplus(0) = ln2 and are
        # sliced off in the wrapper -- harmless.
        out_ref[...] = jnp.where(is_mu, z, sp + is_alpha.astype(jnp.float32))


def prepare_nig_params(w, b, out_units, *, compute_dtype=None,
                       w_vmem_budget=20 << 20):
    """Pad + cast the Linear parameters once (hoisted out of the hot path).

    w: (in_features, 4*out_units), b: (4*out_units,).
    compute_dtype: e.g. jnp.bfloat16 on v6e/v7x (accumulation stays f32).
    """
    in_features, n_out = w.shape
    assert n_out == 4 * out_units
    assert b.shape == (n_out,)

    cdt = jnp.dtype(compute_dtype) if compute_dtype is not None else jnp.dtype(w.dtype)
    itm = cdt.itemsize

    # N tile: a NIG head has small N = 4*out_units, so keep it as one
    # lane-dense tile; fall back to 512-wide tiles only if N is huge.
    n_p = _round_up(n_out, 128)
    tn = n_p if n_p <= 2048 else 512
    n_p = _round_up(n_p, tn)

    # K tile: keep the whole (k_p, tn) W panel VMEM-resident (x2 for the
    # double buffer) when it fits the budget -> W is DMA'd from HBM exactly
    # once and reused across every M tile.  Otherwise tile K at 512 and pad
    # K up to a multiple of the tile (zero-padded K contributes 0 to the dot).
    k_p = _round_up(in_features, 128)
    if 2 * k_p * tn * itm <= w_vmem_budget:
        tk = k_p
    else:
        tk = 512
        k_p = _round_up(k_p, tk)

    w_p = w.astype(cdt)
    if w_p.shape != (k_p, n_p):
        w_p = jnp.pad(w_p, ((0, k_p - in_features), (0, n_p - n_out)))
    b_p = jnp.pad(b.astype(jnp.float32), (0, n_p - n_out)).reshape(1, n_p)

    return NIGParams(w=w_p, b=b_p, in_features=in_features,
                     out_units=out_units, tk=tk, tn=tn)


def normal_inv_gamma(x, params: NIGParams):
    """x: (batch, in_features). Returns (mu, v, alpha, beta), each (batch, out_units)."""
    w_p, b_p = params.w, params.b
    in_features, out_units = params.in_features, params.out_units
    tk, tn = params.tk, params.tn
    k_p, n_p = w_p.shape
    n_out = 4 * out_units

    batch = x.shape[0]
    assert x.shape == (batch, in_features)

    cdt = w_p.dtype
    itm = jnp.dtype(cdt).itemsize
    sub = (8 * 4) // itm                    # 8 (f32), 16 (bf16), 32 (int8/fp8)

    # Batch tile: pick the tile first (cap 512), then pad M up to a multiple.
    # Bigger tm directly cuts the number of times the W panel is re-streamed.
    tm = min(_round_up(batch, sub), 512)
    m_p = _round_up(batch, tm)

    x_c = x.astype(cdt)
    if x_c.shape != (m_p, k_p):
        x_c = jnp.pad(x_c, ((0, m_p - batch), (0, k_p - in_features)))

    grid = (m_p // tm, n_p // tn, k_p // tk)

    # Raise the scoped-VMEM limit only when the tiles actually need it
    # (v5e default is ~16 MiB); keep it <= 48 MiB for v7x's 64 MiB per-TC VMEM.
    est = 2 * (tm * tk + tk * tn) * itm + 2 * tm * tn * 4 + 2 * n_p * 4
    vmem_limit = None
    if est > (12 << 20):
        vmem_limit = int(min(max(2 * est, 32 << 20), 48 << 20))

    kernel = functools.partial(_nig_kernel, out_units=out_units, tn=tn)

    packed = pl.pallas_call(
        kernel,
        out_shape=jax.ShapeDtypeStruct((m_p, n_p), jnp.float32),
        grid_spec=pltpu.PrefetchScalarGridSpec(
            num_scalar_prefetch=0,
            grid=grid,
            in_specs=[
                pl.BlockSpec((tm, tk), lambda i, j, k: (i, k)),   # x
                pl.BlockSpec((tk, tn), lambda i, j, k: (k, j)),   # w (resident when tk=k_p)
                pl.BlockSpec((1, tn), lambda i, j, k: (0, j)),    # bias row
            ],
            out_specs=pl.BlockSpec((tm, tn), lambda i, j, k: (i, j)),
        ),
        compiler_params=pltpu.CompilerParams(
            dimension_semantics=("parallel", "parallel", "arbitrary"),
            vmem_limit_bytes=vmem_limit),
    )(x_c, w_p, b_p)

    # Zero-cost slices in the wrapper: unpad and split into the four heads.
    out = packed[:batch, :n_out]
    mu = out[:, 0 * out_units:1 * out_units]
    v = out[:, 1 * out_units:2 * out_units]
    alpha = out[:, 2 * out_units:3 * out_units]
    beta = out[:, 3 * out_units:4 * out_units]
    return mu, v, alpha, beta


if __name__ == "__main__":
    # Small shapes consistent with the module: batch=8, in_features=32, out_units=16
    batch, in_features, out_units = 8, 32, 16

    key = jax.random.PRNGKey(0)
    kx, kw, kb = jax.random.split(key, 3)

    x = jax.random.normal(kx, (batch, in_features), dtype=jnp.float32)
    # Deterministic "Linear" params (PyTorch-style uniform(-1/sqrt(in), 1/sqrt(in)))
    bound = 1.0 / jnp.sqrt(jnp.float32(in_features))
    w = jax.random.uniform(kw, (in_features, 4 * out_units),
                           minval=-bound, maxval=bound, dtype=jnp.float32)
    b = jax.random.uniform(kb, (4 * out_units,),
                           minval=-bound, maxval=bound, dtype=jnp.float32)

    # f32 compute here so the tight reference check holds; pass
    # compute_dtype=jnp.bfloat16 for v6e/v7x production use.
    params = prepare_nig_params(w, b, out_units)
    mu, v, alpha, beta = normal_inv_gamma(x, params)
    jax.block_until_ready((mu, v, alpha, beta))

    # Reference check in plain JAX
    out_ref = x @ w + b
    mu_r = out_ref[:, :out_units]
    v_r = jax.nn.softplus(out_ref[:, out_units:2 * out_units])
    a_r = jax.nn.softplus(out_ref[:, 2 * out_units:3 * out_units]) + 1.0
    b_r = jax.nn.softplus(out_ref[:, 3 * out_units:])
    assert jnp.allclose(mu, mu_r, atol=1e-5)
    assert jnp.allclose(v, v_r, atol=1e-5)
    assert jnp.allclose(alpha, a_r, atol=1e-5)
    assert jnp.allclose(beta, b_r, atol=1e-5)

    print("KERNEL_OK")
</pallas_src>

<mosaic_0001>
module attributes {stable_mosaic.version = 11 : i64} {
  func.func @_nig_kernel(%arg0: i32, %arg1: i32, %arg2: i32, %arg3: memref<8x128xf32, #tpu.memory_space<vmem>>, %arg4: memref<128x128xf32, #tpu.memory_space<vmem>>, %arg5: memref<1x128xf32, #tpu.memory_space<vmem>>, %arg6: memref<8x128xf32, #tpu.memory_space<vmem>>) attributes {dimension_semantics = [#tpu.dimension_semantics<parallel>, #tpu.dimension_semantics<parallel>, #tpu.dimension_semantics<arbitrary>], iteration_bounds = array<i64: 1, 1, 1>, scalar_prefetch = 0 : i64, scratch_operands = 0 : i64, tpu.core_type = #tpu.core_type<tc>, window_params = [{transform_indices = @transform_0, window_bounds = array<i64: 8, 128>}, {transform_indices = @transform_1, window_bounds = array<i64: 128, 128>}, {transform_indices = @transform_2, window_bounds = array<i64: 1, 128>}, {transform_indices = @transform_3, window_bounds = array<i64: 8, 128>}]} {
    %c0 = arith.constant 0 : index
    %c0_0 = arith.constant 0 : index
    %0 = vector.load %arg3[%c0, %c0_0] : memref<8x128xf32, #tpu.memory_space<vmem>>, vector<8x128xf32>
    %c0_1 = arith.constant 0 : index
    %c0_2 = arith.constant 0 : index
    %1 = vector.load %arg4[%c0_1, %c0_2] : memref<128x128xf32, #tpu.memory_space<vmem>>, vector<128x128xf32>
    %cst = arith.constant dense<0.000000e+00> : vector<8x128xf32>
    %2 = tpu.matmul %0, %1, %cst {dimension_numbers = #tpu.dot_dimension_numbers<[1], [0], [0], [1], [0, 0, 1, 1], [], []>} : vector<8x128xf32>, vector<128x128xf32>, vector<8x128xf32> -> vector<8x128xf32>
    %c0_i32 = arith.constant 0 : i32
    %3 = arith.cmpi eq, %arg2, %c0_i32 : i32
    %4 = arith.extui %3 : i1 to i32
    %c0_i32_3 = arith.constant 0 : i32
    %5 = arith.cmpi ne, %4, %c0_i32_3 : i32
    scf.if %5 {
      %c0_8 = arith.constant 0 : index
      %c0_9 = arith.constant 0 : index
      %12 = vector.load %arg5[%c0_8, %c0_9] : memref<1x128xf32, #tpu.memory_space<vmem>>, vector<1x128xf32>
      %13 = vector.broadcast %12 : vector<1x128xf32> to vector<8x128xf32>
      %14 = arith.addf %2, %13 : vector<8x128xf32>
      %c0_10 = arith.constant 0 : index
      %c0_11 = arith.constant 0 : index
      %15 = vector.load %arg6[%c0_10, %c0_11] : memref<8x128xf32, #tpu.memory_space<vmem>>, vector<8x128xf32>
      tpu.vector_store %arg6[%c0_10, %c0_11], %14 {strides = array<i32>} : memref<8x128xf32, #tpu.memory_space<vmem>>, vector<8x128xf32>,
    } else {
    }
    %c0_i32_4 = arith.constant 0 : i32
    %6 = arith.cmpi ne, %arg2, %c0_i32_4 : i32
    %7 = arith.extui %6 : i1 to i32
    %c0_i32_5 = arith.constant 0 : i32
    %8 = arith.cmpi ne, %7, %c0_i32_5 : i32
    scf.if %8 {
      %c0_8 = arith.constant 0 : index
      %c0_9 = arith.constant 0 : index
      %12 = vector.load %arg6[%c0_8, %c0_9] : memref<8x128xf32, #tpu.memory_space<vmem>>, vector<8x128xf32>
      %13 = arith.addf %12, %2 : vector<8x128xf32>
      %c0_10 = arith.constant 0 : index
      %c0_11 = arith.constant 0 : index
      %14 = vector.load %arg6[%c0_10, %c0_11] : memref<8x128xf32, #tpu.memory_space<vmem>>, vector<8x128xf32>
      tpu.vector_store %arg6[%c0_10, %c0_11], %13 {strides = array<i32>} : memref<8x128xf32, #tpu.memory_space<vmem>>, vector<8x128xf32>,
    } else {
    }
    %c0_i32_6 = arith.constant 0 : i32
    %9 = arith.cmpi eq, %arg2, %c0_i32_6 : i32
    %10 = arith.extui %9 : i1 to i32
    %c0_i32_7 = arith.constant 0 : i32
    %11 = arith.cmpi ne, %10, %c0_i32_7 : i32
    scf.if %11 {
      %c0_8 = arith.constant 0 : index
      %c0_9 = arith.constant 0 : index
      %12 = vector.load %arg6[%c0_8, %c0_9] : memref<8x128xf32, #tpu.memory_space<vmem>>, vector<8x128xf32>
      %cst_10 = arith.constant 0.000000e+00 : f32
      %13 = vector.broadcast %cst_10 : f32 to vector<8x128xf32>
      %14 = arith.maximumf %12, %13 : vector<8x128xf32>
      %15 = math.absf %12 : vector<8x128xf32>
      %cst_11 = arith.constant 0.000000e+00 : f32
      %16 = vector.broadcast %cst_11 : f32 to vector<8x128xf32>
      %17 = arith.subf %16, %15 : vector<8x128xf32>
      %18 = math.exp %17 : vector<8x128xf32>
      %19 = math.log1p %18 : vector<8x128xf32>
      %20 = arith.addf %14, %19 : vector<8x128xf32>
      %c128_i32 = arith.constant 128 : i32
      %21 = arith.muli %arg1, %c128_i32 : i32
      %22 = tpu.iota {dimensions = array<i32: 1>} : vector<8x128xi32>
      %23 = vector.broadcast %21 : i32 to vector<8x128xi32>
      %24 = arith.addi %23, %22 : vector<8x128xi32>
      %c16_i32 = arith.constant 16 : i32
      %25 = vector.broadcast %c16_i32 : i32 to vector<8x128xi32>
      %26 = arith.cmpi slt, %24, %25 : vector<8x128xi32>
      %c32_i32 = arith.constant 32 : i32
      %27 = vector.broadcast %c32_i32 : i32 to vector<8x128xi32>
      %28 = arith.cmpi sge, %24, %27 : vector<8x128xi32>
      %c48_i32 = arith.constant 48 : i32
      %29 = vector.broadcast %c48_i32 : i32 to vector<8x128xi32>
      %30 = arith.cmpi slt, %24, %29 : vector<8x128xi32>
      %31 = arith.andi %28, %30 : vector<8x128xi1>
      %32 = arith.extui %31 : vector<8x128xi1> to vector<8x128xi32>
      %33 = arith.sitofp %32 : vector<8x128xi32> to vector<8x128xf32>
      %34 = arith.addf %20, %33 : vector<8x128xf32>
      %35 = arith.select %26, %12, %34 : vector<8x128xi1>, vector<8x128xf32>
      %c0_12 = arith.constant 0 : index
      %c0_13 = arith.constant 0 : index
      %36 = vector.load %arg6[%c0_12, %c0_13] : memref<8x128xf32, #tpu.memory_space<vmem>>, vector<8x128xf32>
      tpu.vector_store %arg6[%c0_12, %c0_13], %35 {strides = array<i32>} : memref<8x128xf32, #tpu.memory_space<vmem>>, vector<8x128xf32>,
    } else {
    }
    return
  }
  func.func @transform_0(%arg0: i32, %arg1: i32, %arg2: i32) -> (i32, i32) {
    %c0_i32 = arith.constant 0 : i32
    return %arg0, %arg2 : i32, i32
  }
  func.func @transform_1(%arg0: i32, %arg1: i32, %arg2: i32) -> (i32, i32) {
    %c0_i32 = arith.constant 0 : i32
    return %arg2, %arg1 : i32, i32
  }
  func.func @transform_2(%arg0: i32, %arg1: i32, %arg2: i32) -> (i32, i32) {
    %c0_i32 = arith.constant 0 : i32
    %c0_i32_0 = arith.constant 0 : i32
    return %c0_i32, %arg1 : i32, i32
  }
  func.func @transform_3(%arg0: i32, %arg1: i32, %arg2: i32) -> (i32, i32) {
    %c0_i32 = arith.constant 0 : i32
    return %arg0, %arg1 : i32, i32
  }
}

</mosaic_0001>

<bundles_post_ra>
// kernel: tpu_custom_call.1
= control target key start
LH: loop header
LB: loop body
LE: loop exit
PB: predicated region body
PF: predicated region fallthrough
CT: control target
= control target key end

     0   :  { %8 = vsyncpa [#allocation3], 0  ;;  %s435_s0 = inlined_call_operand.hbm [shape: f32[8,128], index: 0, kind: input, shape index: {}]   ;;  %s436_s1 = inlined_call_operand.hbm [shape: f32[128,128], index: 1, kind: input, shape index: {}]   ;;  %s437_s2 = inlined_call_operand.vmem [shape: f32[1,128], index: 2, kind: input, shape index: {}]   ;;  %s438_s3 = inlined_call_operand.hbm [shape: f32[8,128], index: 3, kind: output, shape index: {}]  }
   0x1   :  { %9 = vsyncpa [#allocation6], 0 }
   0x2   :  { %10 = vsyncpa [#allocation4], 0  ;;  %s359_s12 = smov [#allocation2]   ;;  %s360_s14 = smov [#allocation5]  }
   0x3   :  { %s17_s13 = sshll.u32 %s359_s12, 4  ;;  %s26_s15 = sshll.u32 %s360_s14, 4  ;;  %s18_s13 = int_to_ptr.vmem [resolvable:$true] %s17_s13  ;;  %s387_s15 = int_to_ptr.vmem [resolvable:$true] %s26_s15 }
   0x4   :  { %s287_s18 = scalar_lea.hbm %s435_s0, 128 }
   0x5   :  { %p288_p0 = scmp.ne.s32.totalorder %s435_s0, %s287_s18  ;;  %p291_p1 = scmp.lt.u32.totalorder %s287_s18, %s435_s0 }
   0x7   :  { %p293_p2 = pnand %p291_p1, %p288_p0 }
   0x9   :  { %296 = shalt.err (!%p293_p2)
}
   0xa   :  { %s297_s23 = scalar_lea.vmem %s18_s13, 128  ;;  %p302_p4 = scmp.lt.s32.totalorder %s18_s13, %s18_s13 }
   0xb   :  { %p298_p3 = scmp.ne.s32.totalorder %s18_s13, %s297_s23  ;;  %p303_p5 = scmp.lt.s32.totalorder %s297_s23, %s297_s23 }
   0xd   :  { %p304_p6 = por %p303_p5, %p302_p4 }
   0xf   :  { %p305_p7 = pnand %p304_p6, %p298_p3 }
  0x11   :  { %308 = shalt.err (!%p305_p7)
}
  0x12   :  { %20 = dma.hbm_to_vmem [thread:$0]  %s435_s0, 128, %s18_s13, [#allocation3]  }
  0x13   :  { %s309_s28 = scalar_lea.hbm %s436_s1, 2048 }
  0x14   :  { %p310_p8 = scmp.ne.s32.totalorder %s436_s1, %s309_s28  ;;  %p313_p9 = scmp.lt.u32.totalorder %s309_s28, %s436_s1 }
  0x16   :  { %p315_p10 = pnand %p313_p9, %p310_p8 }
  0x18   :  { %318 = shalt.err (!%p315_p10)
}
  0x19   :  { %s319_s6 = scalar_lea.vmem %s387_s15, 2048  ;;  %p324_p12 = scmp.lt.s32.totalorder %s387_s15, %s387_s15 }
  0x1a   :  { %p320_p11 = scmp.ne.s32.totalorder %s387_s15, %s319_s6  ;;  %p325_p13 = scmp.lt.s32.totalorder %s319_s6, %s319_s6 }
  0x1c   :  { %p326_p0 = por %p325_p13, %p324_p12 }
  0x1e   :  { %p327_p1 = pnand %p326_p0, %p320_p11 }
  0x20   :  { %330 = shalt.err (!%p327_p1)
}
  0x21   :  { %s361_s0 = smov 128   ;;  %s362_s7 = smov 8  }
  0x22   :  { %32 = dma.hbm_to_vmem [thread:$0]  %s436_s1, 2048, %s387_s15, [#allocation6], %s361_s0, %s361_s0, %s362_s7  }
  0x23   :  { %353 = dma.done.wait [#allocation3], 128  }
  0x24   :  { %354 = vsyncadd [#allocation3], 4294967168 }
  0x25   :  { %355 = dma.done.wait [#allocation6], 2048  }
  0x26   :  { %356 = vsyncadd [#allocation6], 4294965248  ;;  %v363_v0 = vmov 0.0|0.0   ;;  %vm364_vm0 = vmmov 0   ;;  %v365_v1 = vmov 0.0   ;;  %v42_v2 = vld [vmem:[#allocation5] sm:$0xff]  ;;  %v168_v36 = vlaneseq }
  0x27   :  { %251 = vmatprep.subr.bf16.mxu0 %v363_v0  ;;  %248 = vmatprep.mubr.msk.f32.mxu0 %vm364_vm0, %v365_v1  ;;  %v43_v3 = vld [vmem:[#allocation5 + $0x8] sm:$0xff]  ;;  %v44_v4 = vld [vmem:[#allocation5 + $0x10] sm:$0xff]  ;;  %v45_v6 = vld [vmem:[#allocation5 + $0x18] sm:$0xff] }
  0x28   :  { %v252_v5 = vpack.c.bf16 %v43_v3, %v42_v2  ;;  %v255_v7 = vpack.c.bf16 %v45_v6, %v44_v4  ;;  %v46_v8 = vld [vmem:[#allocation5 + $0x20] sm:$0xff]  ;;  %v47_v9 = vld [vmem:[#allocation5 + $0x28] sm:$0xff]  ;;  %v48_v11 = vld [vmem:[#allocation5 + $0x30] sm:$0xff]  ;;  %v169_v37 = vand.u32 127, %v168_v36 }
  0x29   :  { %v258_v10 = vpack.c.bf16 %v47_v9, %v46_v8  ;;  %v49_v12 = vld [vmem:[#allocation5 + $0x38] sm:$0xff]  ;;  %v50_v14 = vld [vmem:[#allocation5 + $0x40] sm:$0xff]  ;;  %v51_v15 = vld [vmem:[#allocation5 + $0x48] sm:$0xff] }
  0x2a   :  { %253 = vmatpush3.bf16.msra.mxu0 %v252_v5  ;;  %v261_v13 = vpack.c.bf16 %v49_v12, %v48_v11  ;;  %v264_v16 = vpack.c.bf16 %v51_v15, %v50_v14  ;;  %v52_v17 = vld [vmem:[#allocation5 + $0x50] sm:$0xff]  ;;  %v53_v18 = vld [vmem:[#allocation5 + $0x58] sm:$0xff]  ;;  %v54_v20 = vld [vmem:[#allocation5 + $0x60] sm:$0xff]  ;;  %vm173_vm1 = vcmp.ge.s32.totalorder %v169_v37, 32  ;;  %vm174_vm2 = vcmp.lt.s32.totalorder %v169_v37, 48 }
  0x2b   :  { %254 = vmatprep.subr.bf16.mxu0 %v363_v0  ;;  %v267_v19 = vpack.c.bf16 %v53_v18, %v52_v17  ;;  %v55_v21 = vld [vmem:[#allocation5 + $0x68] sm:$0xff]  ;;  %v56_v23 = vld [vmem:[#allocation5 + $0x70] sm:$0xff]  ;;  %v57_v24 = vld [vmem:[#allocation5 + $0x78] sm:$0xff]  ;;  %vm172_vm5 = vcmp.lt.s32.totalorder %v169_v37, 16 }
  0x2c   :  { %v270_v22 = vpack.c.bf16 %v55_v21, %v54_v20  ;;  %v273_v25 = vpack.c.bf16 %v57_v24, %v56_v23  ;;  %v41_v26 = vld [vmem:[#allocation2] sm:$0xff]  ;;  %vm175_vm3 = vmand %vm173_vm1, %vm174_vm2 }
  0x2d   :  { %v197_v27 = vld [vmem:[%s437_s2] ss:$0 sm:$0xff]  ;;  %v198_v45 = vsel %vm175_vm3, 1.0, %v365_v1  ;;  %s366_s2 = smov [#allocation7]  }
  0x2e   :  { %256 = vmatpush3.bf16.msra.mxu0 %v255_v7  ;;  %s187_s11 = sshll.u32 %s366_s2, 4  ;;  %s188_s11 = int_to_ptr.vmem [resolvable:$true] %s187_s11 }
  0x2f   :  { %257 = vmatprep.subr.bf16.mxu0 %v363_v0  ;;  %s331_s12 = scalar_lea.vmem %s188_s11, 128  ;;  %p336_p3 = scmp.lt.s32.totalorder %s188_s11, %s188_s11 }
  0x30   :  { %p332_p2 = scmp.ne.s32.totalorder %s188_s11, %s331_s12  ;;  %p337_p4 = scmp.lt.s32.totalorder %s331_s12, %s331_s12 }
  0x32   :  { %259 = vmatpush3.bf16.msra.mxu0 %v258_v10  ;;  %p338_p5 = por %p337_p4, %p336_p3 }
  0x33   :  { %260 = vmatprep.subr.bf16.mxu0 %v363_v0 }
  0x34   :  { %p339_p6 = pnand %p338_p5, %p332_p2 }
  0x36   :  { %262 = vmatpush3.bf16.msra.mxu0 %v261_v13 }
  0x37   :  { %263 = vmatprep.subr.bf16.mxu0 %v363_v0 }
  0x3a   :  { %265 = vmatpush3.bf16.msra.mxu0 %v264_v16 }
  0x3b   :  { %266 = vmatprep.subr.bf16.mxu0 %v363_v0 }
  0x3e   :  { %268 = vmatpush3.bf16.msra.mxu0 %v267_v19 }
  0x3f   :  { %269 = vmatprep.subr.bf16.mxu0 %v363_v0 }
  0x42   :  { %271 = vmatpush3.bf16.msra.mxu0 %v270_v22 }
  0x43   :  { %272 = vmatprep.subr.bf16.mxu0 %v363_v0 }
  0x46   :  { %274 = vmatpush3.bf16.msra.mxu0 %v273_v25 }
  0x49   :  { %249 = vmatmul.mubr.f32.vlgmr.msra.gmra.mrb[0].mxu0 %v41_v26 }
 0x11c   :  { %v124_v28 = vpop.f32.mrb[0].mxu0 }
 0x11d   :  { %v139_v29 = vadd.f32 %v197_v27, %v124_v28  ;;  %v250_v30 = vpop.f32.mrb[1].mxu0 }
 0x11f   :  { %v153_v31 = vand.u32 2147483647, %v139_v29  ;;  %v152_v44 = vmax.f32 %v139_v29, 0.0 }
 0x121   :  { %v154_v32 = vsub.f32 0.0, %v153_v31 }
 0x123   :  { %v155_v33 = vmul.f32 1.442695, %v154_v32 }
 0x125   :  { %283 = vpow2.f32 %v155_v33 }
 0x12f   :  { %v284_v34 = vpop.eup %283 }
 0x130   :  { %v157_v35 = vadd.f32 1.0, %v284_v34  ;;  %v160_v38 = vmul.f32 -0.5, %v284_v34  ;;  %v163_v40 = vand.u32 2147483647, %v284_v34 }
 0x132   :  { %285 = vlog2.f32 %v157_v35  ;;  %v161_v39 = vadd.f32 1.0, %v160_v38  ;;  %vm164_vm4 = vcmp.lt.f32.partialorder %v163_v40, 0.0004427343 }
 0x134   :  { %v162_v43 = vmul.f32 %v284_v34, %v161_v39 }
 0x13c   :  { %v286_v41 = vpop.eup %285 }
 0x13d   :  { %v159_v42 = vmul.f32 0.6931472, %v286_v41 }
 0x13f   :  { %v165_v46 = vsel %vm164_vm4, %v162_v43, %v159_v42 }
 0x140   :  { %v166_v47 = vadd.f32 %v165_v46, %v152_v44 }
 0x142   :  { %v178_v48 = vadd.f32 %v198_v45, %v166_v47 }
 0x144   :  { %v179_v49 = vsel %vm172_vm5, %v139_v29, %v178_v48 }
 0x145   :  { %180 = vst [vmem:[#allocation7] sm:$0xff] %v179_v49 }
 0x146   :  { %342 = shalt.err (!%p339_p6)
}
 0x147   :  { %s343_s15 = scalar_lea.hbm %s438_s3, 128 }
 0x148   :  { %p344_p7 = scmp.ne.s32.totalorder %s438_s3, %s343_s15  ;;  %p347_p8 = scmp.lt.u32.totalorder %s343_s15, %s438_s3 }
 0x14a   :  { %p349_p9 = pnand %p347_p8, %p344_p7 }
 0x14c   :  { %352 = shalt.err (!%p349_p9)
}
 0x14d   :  { %190 = dma.vmem_to_hbm [thread:$0]  %s188_s11, 128, %s438_s3, [#allocation4]  }
 0x14e   :  { %357 = dma.done.wait [#allocation4], 128  }
 0x14f   :  { %358 = vsyncadd [#allocation4], 4294967168 }
 0x150   :  { %194 = vsyncpa [#allocation3], 1 }
 0x151   :  { %195 = vsyncpa [#allocation6], 1 }
 0x152   :  { %196 = vsyncpa [#allocation4], 1 }

</bundles_post_ra>
